<compile_context>
chip_gen: v6e
topology: v6e:2x2x1
jax: 0.10.0
libtpu: 0.0.40
codegen_flags: <defaults>
</compile_context>

<pallas_src>
import functools

import jax
import jax.numpy as jnp
from jax import lax
from jax.experimental import pallas as pl
from jax.experimental.pallas import tpu as pltpu


_LANE = 128
_SUBLANE = 8
_NEG_BIG = -1e30          # finite "-inf": avoids 0 * inf = NaN on masked lanes
_MAX_ROW_TILE = 4096      # cap on rows per grid step (byte-based sizing below)
_TEMP_F32_PER_ELEM = 5    # f32 temporaries per element (VMEM cost model)
_MIN_RESIDENT_ROWS = 128  # below this, switch to the class-tiled path
_DEFAULT_CLASS_TILE = 2048


def _round_up(x, m):
    return ((x + m - 1) // m) * m


def _cdiv(a, b):
    return (a + b - 1) // b


def _vmem_budgets():
    """(tile_budget_bytes, vmem_limit_cap_bytes) for the current TPU generation."""
    vmem_cap = 64 * 1024 * 1024                        # conservative (v7x) default
    try:
        cap = getattr(pltpu.get_tpu_info(), "vmem_capacity_bytes", None)
        if cap:
            vmem_cap = int(cap)
    except Exception:
        pass
    if vmem_cap >= 96 * 1024 * 1024:                   # v5e / v6e: 128 MiB VMEM
        return 80 * 1024 * 1024, 100 * 1024 * 1024
    return 28 * 1024 * 1024, 44 * 1024 * 1024          # v7x: 64 MiB physical


# --------------------------------------------------------------------------
# Path A: whole class axis resident on the lane axis (one grid axis over rows)
# --------------------------------------------------------------------------
def _xent_resident_kernel(*refs, n_rows, row_tile, has_weight, ragged_rows):
    if has_weight:
        pred_ref, tgt_ref, w_ref, out_ref = refs
    else:
        pred_ref, tgt_ref, out_ref = refs

    x = pred_ref[...].astype(jnp.float32)                        # (TM, C)
    tw = tgt_ref[...].astype(jnp.float32)
    if has_weight:
        tw = tw * w_ref[...]                                     # (1, C) broadcast

    if ragged_rows:
        # Last tile may run past n_rows (grid = cdiv): neutralize those rows so
        # any garbage (even NaN/Inf) read past the array end contributes 0.
        row = pl.program_id(0) * row_tile + lax.broadcasted_iota(
            jnp.int32, x.shape, 0)
        valid = row < n_rows
        x = jnp.where(valid, x, 0.0)
        tw = jnp.where(valid, tw, 0.0)

    # log_softmax folded algebraically, per row:
    #   loss = -(sum(tw * s) - lse * sum(tw)),  s = x - max,  lse = log(sum(exp(s)))
    m = jnp.max(x, axis=-1, keepdims=True)
    s = x - m
    lse = jnp.log(jnp.sum(jnp.exp(s), axis=-1, keepdims=True))
    a = jnp.sum(tw * s, axis=-1, keepdims=True)
    b = jnp.sum(tw, axis=-1, keepdims=True)
    # Per-tile partial sum: one (1, 1) scalar block per grid step.
    out_ref[...] = -jnp.sum(a - lse * b, axis=0, keepdims=True)


# --------------------------------------------------------------------------
# Path B: class-tiled online logsumexp (vocab-scale C)
# --------------------------------------------------------------------------
def _xent_class_tiled_kernel(*refs, n_rows, c, row_tile, class_tile,
                             has_weight, ragged_rows, ragged_cols):
    if has_weight:
        pred_ref, tgt_ref, w_ref, out_ref, m_sc, l_sc, a_sc, b_sc = refs
    else:
        pred_ref, tgt_ref, out_ref, m_sc, l_sc, a_sc, b_sc = refs

    j = pl.program_id(1)

    @pl.when(j == 0)
    def _():
        m_sc[...] = jnp.full_like(m_sc, _NEG_BIG)
        l_sc[...] = jnp.zeros_like(l_sc)
        a_sc[...] = jnp.zeros_like(a_sc)
        b_sc[...] = jnp.zeros_like(b_sc)

    x = pred_ref[...].astype(jnp.float32)                        # (TM, TC)
    tw = tgt_ref[...].astype(jnp.float32)
    if has_weight:
        tw = tw * w_ref[...]                                     # (1, TC) broadcast

    if ragged_rows or ragged_cols:
        valid = None
        if ragged_rows:
            row = pl.program_id(0) * row_tile + lax.broadcasted_iota(
                jnp.int32, x.shape, 0)
            valid = row < n_rows
        if ragged_cols:
            col = j * class_tile + lax.broadcasted_iota(jnp.int32, x.shape, 1)
            cmask = col < c
            valid = cmask if valid is None else (valid & cmask)
        x = jnp.where(valid, x, _NEG_BIG)
        tw = jnp.where(valid, tw, 0.0)

    # Online logsumexp across class tiles.
    m_prev = m_sc[...]
    m_new = jnp.maximum(m_prev, jnp.max(x, axis=-1, keepdims=True))
    l_sc[...] = (l_sc[...] * jnp.exp(m_prev - m_new)
                 + jnp.sum(jnp.exp(x - m_new), axis=-1, keepdims=True))
    m_sc[...] = m_new
    a_sc[...] += jnp.sum(tw * x, axis=-1, keepdims=True)
    b_sc[...] += jnp.sum(tw, axis=-1, keepdims=True)

    @pl.when(j == pl.num_programs(1) - 1)
    def _():
        lse = m_sc[...] + jnp.log(l_sc[...])
        out_ref[...] = -jnp.sum(a_sc[...] - lse * b_sc[...], axis=0,
                                keepdims=True)


# --------------------------------------------------------------------------
# Wrapper
# --------------------------------------------------------------------------
def dense_cross_entropy_loss(pred, target, weight=None, reduction="mean",
                             dim=-1, class_tiled=None, class_tile=None,
                             row_tile=None):
    """pred/target: same shape; softmax over `dim`. weight: (C,) along the
    softmax axis or None. reduction: 'mean' (default) or anything else = sum."""
    assert pred.shape == target.shape, (
        f"Preds and targets have different sizes: {pred.shape} {target.shape}")

    if dim not in (-1, pred.ndim - 1):
        pred = jnp.moveaxis(pred, dim, -1)
        target = jnp.moveaxis(target, dim, -1)

    c = pred.shape[-1]
    pred2 = pred.reshape(-1, c)            # keep HBM dtype (bf16 stays bf16)
    tgt2 = target.reshape(-1, c)
    n_rows = pred2.shape[0]

    has_weight = weight is not None
    if has_weight:
        w2 = jnp.asarray(weight).reshape(1, c).astype(jnp.float32)

    ip = pred2.dtype.itemsize
    it = tgt2.dtype.itemsize
    tile_budget, vmem_cap = _vmem_budgets()

    rows8 = _round_up(max(n_rows, 1), _SUBLANE)
    bytes_per_row = c * (2 * (ip + it) + _TEMP_F32_PER_ELEM * 4)
    budget_rows = tile_budget // max(bytes_per_row, 1)

    if class_tiled is None:
        class_tiled = budget_rows < _MIN_RESIDENT_ROWS

    if not class_tiled:
        # ------- Path A: class axis fully resident on lanes ----------------
        if row_tile is None:
            tm = max(_SUBLANE, min((budget_rows // _SUBLANE) * _SUBLANE,
                                   _MAX_ROW_TILE, rows8))
        else:
            tm = max(_SUBLANE, min(_round_up(int(row_tile), _SUBLANE), rows8))
        n_tiles = _cdiv(n_rows, tm)
        ragged_rows = (n_rows % tm) != 0

        vmem_need = (2 * tm * c * (ip + it)                 # double-buffered inputs
                     + _TEMP_F32_PER_ELEM * tm * c * 4      # f32 temporaries
                     + (2 * c * 4 if has_weight else 0)     # weight buffers
                     + (2 << 20))                           # slack
        vmem_limit = int(min(max(vmem_need, 16 * 1024 * 1024), vmem_cap))

        kernel = functools.partial(
            _xent_resident_kernel, n_rows=n_rows, row_tile=tm,
            has_weight=has_weight, ragged_rows=ragged_rows)

        in_specs = [pl.BlockSpec((tm, c), lambda i: (i, 0)),
                    pl.BlockSpec((tm, c), lambda i: (i, 0))]
        operands = [pred2, tgt2]
        if has_weight:
            in_specs.append(pl.BlockSpec((1, c), lambda i: (0, 0)))
            operands.append(w2)

        per_tile = pl.pallas_call(
            kernel,
            out_shape=jax.ShapeDtypeStruct((n_tiles, 1), jnp.float32),
            grid_spec=pltpu.PrefetchScalarGridSpec(
                num_scalar_prefetch=0,
                grid=(n_tiles,),
                in_specs=in_specs,
                out_specs=pl.BlockSpec((1, 1), lambda i: (i, 0)),
            ),
            compiler_params=pltpu.CompilerParams(
                dimension_semantics=("parallel",),
                vmem_limit_bytes=vmem_limit,
            ),
        )(*operands)
    else:
        # ------- Path B: class-tiled online logsumexp ----------------------
        tc = class_tile if class_tile is not None else min(
            _DEFAULT_CLASS_TILE, _round_up(c, _LANE))
        tc = max(_LANE, _round_up(int(tc), _LANE))
        per_elem = 2 * (ip + it) + _TEMP_F32_PER_ELEM * 4
        if row_tile is None:
            tm = tile_budget // (tc * per_elem)
            tm = max(_SUBLANE, min((tm // _SUBLANE) * _SUBLANE, 1024, rows8))
        else:
            tm = max(_SUBLANE, min(_round_up(int(row_tile), _SUBLANE), rows8))
        n_row_tiles = _cdiv(n_rows, tm)
        n_class_tiles = _cdiv(c, tc)
        ragged_rows = (n_rows % tm) != 0
        ragged_cols = (c % tc) != 0

        vmem_need = (2 * tm * tc * (ip + it)
                     + _TEMP_F32_PER_ELEM * tm * tc * 4
                     + (2 * tc * 4 if has_weight else 0)
                     + 4 * tm * 4                           # (TM,1) accumulators
                     + (2 << 20))
        vmem_limit = int(min(max(vmem_need, 16 * 1024 * 1024), vmem_cap))

        kernel = functools.partial(
            _xent_class_tiled_kernel, n_rows=n_rows, c=c, row_tile=tm,
            class_tile=tc, has_weight=has_weight,
            ragged_rows=ragged_rows, ragged_cols=ragged_cols)

        in_specs = [pl.BlockSpec((tm, tc), lambda i, j: (i, j)),
                    pl.BlockSpec((tm, tc), lambda i, j: (i, j))]
        operands = [pred2, tgt2]
        if has_weight:
            in_specs.append(pl.BlockSpec((1, tc), lambda i, j: (0, j)))
            operands.append(w2)

        per_tile = pl.pallas_call(
            kernel,
            out_shape=jax.ShapeDtypeStruct((n_row_tiles, 1), jnp.float32),
            grid_spec=pltpu.PrefetchScalarGridSpec(
                num_scalar_prefetch=0,
                grid=(n_row_tiles, n_class_tiles),
                in_specs=in_specs,
                out_specs=pl.BlockSpec((1, 1), lambda i, j: (i, 0)),
                scratch_shapes=[pltpu.VMEM((tm, 1), jnp.float32)] * 4,
            ),
            compiler_params=pltpu.CompilerParams(
                dimension_semantics=("parallel", "arbitrary"),
                vmem_limit_bytes=vmem_limit,
            ),
        )(*operands)

    # Tiny final reduction in XLA (tree sum, masked tiles contribute exactly 0).
    loss_sum = jnp.sum(per_tile)
    if reduction == "mean":
        return loss_sum / jnp.float32(n_rows)
    return loss_sum


# --------------------------------------------------------------------------
# Pure-JAX reference + self test
# --------------------------------------------------------------------------
def _reference(pred, target, weight=None, reduction="mean", dim=-1):
    logp = jax.nn.log_softmax(pred.astype(jnp.float32), axis=dim)
    if weight is not None:
        shape = [1] * pred.ndim
        shape[dim] = -1
        logp = logp * weight.astype(jnp.float32).reshape(shape)
    loss = jnp.sum(-target.astype(jnp.float32) * logp, axis=dim)
    return jnp.mean(loss) if reduction == "mean" else jnp.sum(loss)


if __name__ == "__main__":
    key = jax.random.PRNGKey(0)
    ks = jax.random.split(key, 8)

    # 1) f32, class weight, reduction='mean' (class-resident path).
    B, S, C = 2, 8, 32
    pred = jax.random.normal(ks[0], (B, S, C), dtype=jnp.float32)
    target = jax.nn.softmax(
        jax.random.normal(ks[1], (B, S, C), dtype=jnp.float32), axis=-1)
    weight = 0.5 + jax.random.uniform(ks[2], (C,), dtype=jnp.float32)
    out = jax.block_until_ready(
        dense_cross_entropy_loss(pred, target, weight=weight, reduction="mean"))
    ref = _reference(pred, target, weight=weight, reduction="mean")
    assert jnp.allclose(out, ref, rtol=1e-5, atol=1e-5), (out, ref)

    # 2) bf16 inputs in HBM, no weight, reduction='sum' (unweighted kernel).
    out2 = jax.block_until_ready(
        dense_cross_entropy_loss(pred.astype(jnp.bfloat16),
                                 target.astype(jnp.bfloat16),
                                 weight=None, reduction="sum"))
    ref2 = _reference(pred.astype(jnp.bfloat16).astype(jnp.float32),
                      target.astype(jnp.bfloat16).astype(jnp.float32),
                      weight=None, reduction="sum")
    assert jnp.allclose(out2, ref2, rtol=2e-2, atol=2e-2), (out2, ref2)

    # 3) ragged rows (15) and non-128 class width (48): in-kernel row mask.
    p3 = jax.random.normal(ks[3], (3, 5, 48), dtype=jnp.float32)
    t3 = jax.nn.softmax(
        jax.random.normal(ks[4], (3, 5, 48), dtype=jnp.float32), axis=-1)
    out3 = jax.block_until_ready(
        dense_cross_entropy_loss(p3, t3, weight=None, reduction="mean"))
    ref3 = _reference(p3, t3, weight=None, reduction="mean")
    assert jnp.allclose(out3, ref3, rtol=1e-5, atol=1e-5), (out3, ref3)

    # 3b) softmax over a non-last dim.
    p3b = jax.random.normal(ks[5], (2, 6, 4), dtype=jnp.float32)
    t3b = jax.nn.softmax(
        jax.random.normal(ks[6], (2, 6, 4), dtype=jnp.float32), axis=1)
    out3b = jax.block_until_ready(
        dense_cross_entropy_loss(p3b, t3b, weight=None, reduction="mean", dim=1))
    ref3b = _reference(p3b, t3b, weight=None, reduction="mean", dim=1)
    assert jnp.allclose(out3b, ref3b, rtol=1e-5, atol=1e-5), (out3b, ref3b)

    # 4) multi-tile row grid with a ragged last tile (forced small row tile).
    p4 = jax.random.normal(ks[5], (40, 64), dtype=jnp.float32)
    t4 = jax.nn.softmax(
        jax.random.normal(ks[6], (40, 64), dtype=jnp.float32), axis=-1)
    out4 = jax.block_until_ready(
        dense_cross_entropy_loss(p4, t4, weight=None, reduction="sum",
                                 row_tile=16))
    ref4 = _reference(p4, t4, weight=None, reduction="sum")
    assert jnp.allclose(out4, ref4, rtol=1e-5, atol=1e-4), (out4, ref4)

    # 5) class-tiled online-logsumexp path (forced), weighted, ragged rows+cols.
    p5 = jax.random.normal(ks[7], (20, 320), dtype=jnp.float32)
    t5 = jax.nn.softmax(
        jax.random.normal(ks[0], (20, 320), dtype=jnp.float32), axis=-1)
    w5 = 0.5 + jax.random.uniform(ks[1], (320,), dtype=jnp.float32)
    out5 = jax.block_until_ready(
        dense_cross_entropy_loss(p5, t5, weight=w5, reduction="mean",
                                 class_tiled=True, class_tile=128))
    ref5 = _reference(p5, t5, weight=w5, reduction="mean")
    assert jnp.allclose(out5, ref5, rtol=1e-5, atol=1e-5), (out5, ref5)

    # 6) class-tiled path, unweighted, reduction='sum'.
    out6 = jax.block_until_ready(
        dense_cross_entropy_loss(p5, t5, weight=None, reduction="sum",
                                 class_tiled=True, class_tile=128))
    ref6 = _reference(p5, t5, weight=None, reduction="sum")
    assert jnp.allclose(out6, ref6, rtol=1e-5, atol=1e-4), (out6, ref6)

    print("KERNEL_OK")
</pallas_src>

<mosaic_0001>
module attributes {stable_mosaic.version = 11 : i64} {
  func.func @_xent_resident_kernel(%arg0: i32, %arg1: memref<16x32xf32, #tpu.memory_space<vmem>>, %arg2: memref<16x32xf32, #tpu.memory_space<vmem>>, %arg3: memref<1x32xf32, #tpu.memory_space<vmem>>, %arg4: memref<1x1xf32, #tpu.memory_space<vmem>>) attributes {dimension_semantics = [#tpu.dimension_semantics<parallel>], iteration_bounds = array<i64: 1>, scalar_prefetch = 0 : i64, scratch_operands = 0 : i64, tpu.core_type = #tpu.core_type<tc>, window_params = [{transform_indices = @transform_0, window_bounds = array<i64: 16, 32>}, {transform_indices = @transform_1, window_bounds = array<i64: 16, 32>}, {pipeline_mode = #tpu.pipeline_mode<synchronous>, transform_indices = @transform_2, window_bounds = array<i64: 1, 32>}, {transform_indices = @transform_3, window_bounds = array<i64: 1, 1>}]} {
    %c0 = arith.constant 0 : index
    %c0_0 = arith.constant 0 : index
    %0 = vector.load %arg1[%c0, %c0_0] : memref<16x32xf32, #tpu.memory_space<vmem>>, vector<16x32xf32>
    %c0_1 = arith.constant 0 : index
    %c0_2 = arith.constant 0 : index
    %1 = vector.load %arg2[%c0_1, %c0_2] : memref<16x32xf32, #tpu.memory_space<vmem>>, vector<16x32xf32>
    %c0_3 = arith.constant 0 : index
    %c0_4 = arith.constant 0 : index
    %2 = vector.load %arg3[%c0_3, %c0_4] : memref<1x32xf32, #tpu.memory_space<vmem>>, vector<1x32xf32>
    %3 = vector.broadcast %2 : vector<1x32xf32> to vector<16x32xf32>
    %4 = arith.mulf %1, %3 : vector<16x32xf32>
    %cst = arith.constant dense<0xFF800000> : vector<16xf32>
    %5 = vector.multi_reduction <maximumf>, %0, %cst [1] : vector<16x32xf32> to vector<16xf32>
    %6 = vector.shape_cast %5 : vector<16xf32> to vector<16x1xf32>
    %7 = vector.broadcast %6 : vector<16x1xf32> to vector<16x32xf32>
    %8 = arith.subf %0, %7 : vector<16x32xf32>
    %9 = math.exp %8 : vector<16x32xf32>
    %cst_5 = arith.constant dense<0.000000e+00> : vector<16xf32>
    %10 = vector.multi_reduction <add>, %9, %cst_5 [1] : vector<16x32xf32> to vector<16xf32>
    %11 = vector.shape_cast %10 : vector<16xf32> to vector<16x1xf32>
    %12 = math.log %11 : vector<16x1xf32>
    %13 = arith.mulf %4, %8 : vector<16x32xf32>
    %cst_6 = arith.constant dense<0.000000e+00> : vector<16xf32>
    %14 = vector.multi_reduction <add>, %13, %cst_6 [1] : vector<16x32xf32> to vector<16xf32>
    %15 = vector.shape_cast %14 : vector<16xf32> to vector<16x1xf32>
    %cst_7 = arith.constant dense<0.000000e+00> : vector<16xf32>
    %16 = vector.multi_reduction <add>, %4, %cst_7 [1] : vector<16x32xf32> to vector<16xf32>
    %17 = vector.shape_cast %16 : vector<16xf32> to vector<16x1xf32>
    %18 = arith.mulf %12, %17 : vector<16x1xf32>
    %19 = arith.subf %15, %18 : vector<16x1xf32>
    %cst_8 = arith.constant dense<0.000000e+00> : vector<1xf32>
    %20 = vector.multi_reduction <add>, %19, %cst_8 [0] : vector<16x1xf32> to vector<1xf32>
    %21 = vector.shape_cast %20 : vector<1xf32> to vector<1x1xf32>
    %cst_9 = arith.constant 0.000000e+00 : f32
    %22 = vector.broadcast %cst_9 : f32 to vector<1x1xf32>
    %23 = arith.subf %22, %21 : vector<1x1xf32>
    %c0_10 = arith.constant 0 : index
    %c0_11 = arith.constant 0 : index
    %24 = vector.load %arg4[%c0_10, %c0_11] : memref<1x1xf32, #tpu.memory_space<vmem>>, vector<1x1xf32>
    tpu.vector_store %arg4[%c0_10, %c0_11], %23 {strides = array<i32>} : memref<1x1xf32, #tpu.memory_space<vmem>>, vector<1x1xf32>,
    return
  }
  func.func @transform_0(%arg0: i32) -> (i32, i32) {
    %c0_i32 = arith.constant 0 : i32
    %c0_i32_0 = arith.constant 0 : i32
    return %arg0, %c0_i32 : i32, i32
  }
  func.func @transform_1(%arg0: i32) -> (i32, i32) {
    %c0_i32 = arith.constant 0 : i32
    %c0_i32_0 = arith.constant 0 : i32
    return %arg0, %c0_i32 : i32, i32
  }
  func.func @transform_2(%arg0: i32) -> (i32, i32) {
    %c0_i32 = arith.constant 0 : i32
    %c0_i32_0 = arith.constant 0 : i32
    %c0_i32_1 = arith.constant 0 : i32
    return %c0_i32, %c0_i32_0 : i32, i32
  }
  func.func @transform_3(%arg0: i32) -> (i32, i32) {
    %c0_i32 = arith.constant 0 : i32
    %c0_i32_0 = arith.constant 0 : i32
    return %arg0, %c0_i32 : i32, i32
  }
}

</mosaic_0001>

<bundles_post_ra>
// kernel: tpu_custom_call.1
= control target key start
LH: loop header
LB: loop body
LE: loop exit
PB: predicated region body
PF: predicated region fallthrough
CT: control target
= control target key end

     0   :  { %8 = vsyncpa [#allocation3], 0  ;;  %s248_s0 = inlined_call_operand.hbm [shape: f32[16,32], index: 0, kind: input, shape index: {}]   ;;  %s249_s1 = inlined_call_operand.hbm [shape: f32[16,32], index: 1, kind: input, shape index: {}]   ;;  %s250_s2 = inlined_call_operand.vmem [shape: f32[1,32], index: 2, kind: input, shape index: {}]   ;;  %s251_s3 = inlined_call_operand.hbm [shape: f32[1,1], index: 3, kind: output, shape index: {}]  }
   0x1   :  { %9 = vsyncpa [#allocation6], 0 }
   0x2   :  { %10 = vsyncpa [#allocation4], 0  ;;  %s203_s12 = smov [#allocation2]  }
   0x3   :  { %s16_s13 = sshll.u32 %s203_s12, 4  ;;  %s17_s13 = int_to_ptr.vmem [resolvable:$true] %s16_s13 }
   0x4   :  { %s145_s14 = scalar_lea.vmem %s17_s13, 256  ;;  %p150_p1 = scmp.lt.s32.totalorder %s17_s13, %s17_s13 }
   0x5   :  { %p146_p0 = scmp.ne.s32.totalorder %s17_s13, %s145_s14  ;;  %p151_p2 = scmp.lt.s32.totalorder %s145_s14, %s145_s14 }
   0x7   :  { %p152_p3 = por %p151_p2, %p150_p1 }
   0x9   :  { %p153_p4 = pnand %p152_p3, %p146_p0 }
   0xb   :  { %156 = shalt.err (!%p153_p4)
}
   0xc   :  { %s204_s15 = smov 128   ;;  %s205_s16 = smov 8  }
   0xd   :  { %22 = dma.hbm_to_vmem [thread:$0]  %s248_s0, 256, %s17_s13, [#allocation3], %s204_s15, %s204_s15, %s205_s16  }
   0xe   :  { %s206_s19 = smov [#allocation5]  }
   0xf   :  { %s28_s20 = sshll.u32 %s206_s19, 4  ;;  %s29_s20 = int_to_ptr.vmem [resolvable:$true] %s28_s20 }
  0x10   :  { %s165_s21 = scalar_lea.vmem %s29_s20, 256  ;;  %p170_p6 = scmp.lt.s32.totalorder %s29_s20, %s29_s20 }
  0x11   :  { %p166_p5 = scmp.ne.s32.totalorder %s29_s20, %s165_s21  ;;  %p171_p7 = scmp.lt.s32.totalorder %s165_s21, %s165_s21 }
  0x13   :  { %p172_p8 = por %p171_p7, %p170_p6 }
  0x15   :  { %p173_p9 = pnand %p172_p8, %p166_p5 }
  0x17   :  { %176 = shalt.err (!%p173_p9)
}
  0x18   :  { %34 = dma.hbm_to_vmem [thread:$0]  %s249_s1, 256, %s29_s20, [#allocation6], %s204_s15, %s204_s15, %s205_s16  }
  0x19   :  { %197 = dma.done.wait [#allocation3], 256  }
  0x1a   :  { %198 = vsyncadd [#allocation3], 4294967040 }
  0x1b   :  { %199 = dma.done.wait [#allocation6], 256  }
  0x1c   :  { %200 = vsyncadd [#allocation6], 4294967040  ;;  %vm56_vm0 = vcmask 261120   ;;  %v43_v0 = vld [vmem:[#allocation2] sm:$0xff]  ;;  %v44_v1 = vld [vmem:[#allocation2 + $0x8] sm:$0xff]  ;;  %s207_s1 = smov [#allocation7]  }
  0x1d   :  { %v57_v2 = vsel %vm56_vm0, %v43_v0, -inf  ;;  %v60_v3 = vsel %vm56_vm0, %v44_v1, -inf  ;;  %v45_v4 = vld [vmem:[#allocation5] sm:$0xff]  ;;  %v123_v5 = vld [vmem:[%s250_s2] ss:$0 sm:$0xff]  ;;  %v46_v18 = vld [vmem:[#allocation5 + $0x8] sm:$0xff] }
  0x1e   :  { %58 = vmax.xlane.f32.xlu0 %v57_v2  ;;  %v54_v6 = vmul.f32 %v123_v5, %v45_v4  ;;  %v55_v21 = vmul.f32 %v123_v5, %v46_v18  ;;  %s113_s2 = sshll.u32 %s207_s1, 4  ;;  %vm105_vm1 = vcmask 0   ;;  %s114_s2 = int_to_ptr.vmem [resolvable:$true] %s113_s2 }
  0x1f   :  { %s177_s25 = scalar_lea.vmem %s114_s2, 16  ;;  %s181_s26 = scalar_lea.vmem %s114_s2, 32 }
  0x20   :  { %v87_v7 = vsel %vm56_vm0, %v54_v6, 0.0  ;;  %v90_v22 = vsel %vm56_vm0, %v55_v21, 0.0  ;;  %p178_p10 = scmp.ne.s32.totalorder %s114_s2, %s177_s25  ;;  %p182_p11 = scmp.lt.s32.totalorder %s114_s2, %s114_s2 }
  0x21   :  { %p183_p12 = scmp.lt.s32.totalorder %s181_s26, %s177_s25 }
  0x22   :  { %61 = vmax.xlane.f32.xlu0 %v60_v3 }
  0x23   :  { %p184_p13 = por %p183_p12, %p182_p11 }
  0x25   :  { %p185_p0 = pnand %p184_p13, %p178_p10 }
  0x26   :  { %88 = vadd.xlane.f32.xlu0 %v87_v7 }
  0xa7   :  { %v59_v8 = vpop.xlane.xlu0 %58 }
  0xa8   :  { %v63_v9 = vsub.f32 %v43_v0, %v59_v8 }
  0xaa   :  { %v65_v10 = vmul.f32 1.442695, %v63_v9  ;;  %v79_v11 = vmul.f32 %v63_v9, %v54_v6 }
  0xab   :  { %v62_v12 = vpop.xlane.xlu0 %61 }
  0xac   :  { %129 = vpow2.f32 %v65_v10  ;;  %v64_v13 = vsub.f32 %v44_v1, %v62_v12  ;;  %v81_v14 = vsel %vm56_vm0, %v79_v11, 0.0 }
  0xad   :  { %82 = vadd.xlane.f32.xlu0 %v81_v14 }
  0xae   :  { %v67_v15 = vmul.f32 1.442695, %v64_v13  ;;  %v80_v23 = vmul.f32 %v64_v13, %v55_v21 }
  0xaf   :  { %v89_v29 = vpop.xlane.xlu0 %88 }
  0xb0   :  { %131 = vpow2.f32 %v67_v15  ;;  %v84_v24 = vsel %vm56_vm0, %v80_v23, 0.0 }
  0xb9   :  { %v130_v16 = vpop.eup %129 }
  0xba   :  { %v69_v17 = vsel %vm56_vm0, %v130_v16, 0.0 }
  0xbb   :  { %70 = vadd.xlane.f32.xlu1 %v69_v17 }
  0xbd   :  { %v132_v19 = vpop.eup %131 }
  0xbe   :  { %v72_v20 = vsel %vm56_vm0, %v132_v19, 0.0 }
  0xbf   :  { %73 = vadd.xlane.f32.xlu1 %v72_v20 }
  0xc3   :  { %91 = vadd.xlane.f32.xlu1 %v90_v22 }
  0xc7   :  { %85 = vadd.xlane.f32.xlu1 %v84_v24 }
 0x136   :  { %v83_v35 = vpop.xlane.xlu0 %82 }
 0x144   :  { %v71_v25 = vpop.xlane.xlu1 %70 }
 0x145   :  { %133 = vlog2.f32 %v71_v25 }
 0x148   :  { %v74_v26 = vpop.xlane.xlu1 %73 }
 0x149   :  { %135 = vlog2.f32 %v74_v26 }
 0x14c   :  { %v92_v30 = vpop.xlane.xlu1 %91 }
 0x150   :  { %v86_v36 = vpop.xlane.xlu1 %85 }
 0x152   :  { %v134_v27 = vpop.eup %133 }
 0x153   :  { %v76_v28 = vmul.f32 0.6931472, %v134_v27 }
 0x155   :  { %v93_v32 = vmul.f32 %v89_v29, %v76_v28 }
 0x156   :  { %v136_v31 = vpop.eup %135 }
 0x157   :  { %v78_v33 = vmul.f32 0.6931472, %v136_v31  ;;  %v95_v37 = vsub.f32 %v83_v35, %v93_v32 }
 0x159   :  { %v94_v34 = vmul.f32 %v92_v30, %v78_v33 }
 0x15b   :  { %v96_v38 = vsub.f32 %v86_v36, %v94_v34 }
 0x15d   :  { %v97_v39 = vadd.f32 %v96_v38, %v95_v37 }
 0x15f   :  { %v98_v40 = vrot.slane %v97_v39, 4 }
 0x161   :  { %v99_v41 = vadd.f32 %v98_v40, %v97_v39 }
 0x163   :  { %v100_v42 = vrot.slane %v99_v41, 2 }
 0x165   :  { %v101_v43 = vadd.f32 %v100_v42, %v99_v41 }
 0x167   :  { %v102_v44 = vrot.slane %v101_v43, 1 }
 0x169   :  { %v103_v45 = vadd.f32 %v102_v44, %v101_v43 }
 0x16b   :  { %v104_v46 = vsub.f32 0.0, %v103_v45 }
 0x16d   :  { %106 = vst.msk [vmem:[#allocation7] sm:$0x1] %vm105_vm1, %v104_v46 }
 0x16e   :  { %188 = shalt.err (!%p185_p0)
}
 0x16f   :  { %116 = dma.vmem_to_hbm [thread:$0]  %s114_s2, 16, %s251_s3, [#allocation4]  }
 0x170   :  { %201 = dma.done.wait [#allocation4], 16  }
 0x171   :  { %202 = vsyncadd [#allocation4], 4294967280 }
 0x172   :  { %120 = vsyncpa [#allocation3], 1 }
 0x173   :  { %121 = vsyncpa [#allocation6], 1 }
 0x174   :  { %122 = vsyncpa [#allocation4], 1 }

</bundles_post_ra>
